<compile_context>
chip_gen: v7x
topology: tpu7x:2x2x1
jax: 0.10.0
libtpu: 0.0.40
codegen_flags: <defaults>
</compile_context>

<pallas_src>
import functools

import jax
import jax.numpy as jnp
from jax.experimental import pallas as pl
from jax.experimental.pallas import tpu as pltpu


def _round_up(x: int, m: int) -> int:
    return ((x + m - 1) // m) * m


def _ffn_adapter_kernel(x_ref, g_ref, beta_ref,
                        w1_ref, b1_ref, w2_ref, b2_ref,
                        wd_ref, bd_ref, wu_ref, bu_ref,
                        o_ref, *, d_model: int, eps: float, ffn_act: str):
    x = x_ref[...]                          # (tm, Dp), native dtype (read once)
    xf = x.astype(jnp.float32)

    # ---- LayerNorm over the true (unpadded) hidden width; padded cols of x are 0.
    inv_d = 1.0 / d_model
    mean = jnp.sum(xf, axis=-1, keepdims=True) * inv_d
    col = jax.lax.broadcasted_iota(jnp.int32, xf.shape, 1)
    centered = jnp.where(col < d_model, xf - mean, 0.0)
    var = jnp.sum(centered * centered, axis=-1, keepdims=True) * inv_d
    gamma = g_ref[...].astype(jnp.float32)
    beta = beta_ref[...].astype(jnp.float32)
    h = centered * jax.lax.rsqrt(var + eps) * gamma + beta

    # ---- FFN: w_1 -> actv -> (dropout_1 = id) -> w_2 -> (dropout_2 = id) ----
    b1 = b1_ref[...].astype(jnp.float32)
    b2 = b2_ref[...].astype(jnp.float32)
    inter = jnp.dot(h.astype(w1_ref.dtype), w1_ref[...],
                    preferred_element_type=jnp.float32) + b1
    if ffn_act == "relu":                   # OpenNMT PositionwiseFeedForward default
        inter = jnp.maximum(inter, 0.0)
    else:                                   # "gelu" variant of feed_forward.actv
        inter = jax.nn.gelu(inter, approximate=False)
    ffn = jnp.dot(inter.astype(w2_ref.dtype), w2_ref[...],
                  preferred_element_type=jnp.float32) + b2

    # ---- Adapter_func: down -> relu -> up, with adapter residual ----
    bd = bd_ref[...].astype(jnp.float32)
    bu = bu_ref[...].astype(jnp.float32)
    down = jnp.dot(ffn.astype(wd_ref.dtype), wd_ref[...],
                   preferred_element_type=jnp.float32) + bd
    down = jnp.maximum(down, 0.0)
    up = jnp.dot(down.astype(wu_ref.dtype), wu_ref[...],
                 preferred_element_type=jnp.float32) + bu

    # adapter residual (ffn) + outer residual (x); lane-dense (tm, Dp) store.
    o_ref[...] = (ffn + up + xf).astype(o_ref.dtype)


def _resident_spec(shape, single_buffer: bool):
    """BlockSpec for grid-invariant (weight/bias) operands."""
    index_map = lambda i, _shape=shape: (0,) * len(_shape)
    if single_buffer:
        # Constant index_map => the block never changes; one VMEM buffer suffices.
        return pl.BlockSpec(shape, index_map, pipeline_mode=pl.Buffered(1))
    return pl.BlockSpec(shape, index_map)


def _pick_row_tile(m, requested, dp, fp, ap, x_bytes, w_bytes, wbuf):
    """Pick the row tile: as large as requested, but (a) keep >= 2 grid steps when
    there is enough work (v7x has 2 TensorCores) and (b) fit a ~48 MiB VMEM budget
    (v7x has only 64 MiB per TensorCore)."""
    tm = max(8, min(requested, _round_up(max(-(-m // 2), 8), 8)))

    def vmem_bytes(t):
        tiles = 2 * t * dp * x_bytes + 2 * t * dp * x_bytes       # in + out, double-buffered
        weights = wbuf * w_bytes * (2 * dp * fp + 2 * dp * ap)
        biases = wbuf * w_bytes * (4 * dp + fp + ap)
        temps = 4 * t * (4 * dp + 2 * fp + 2 * ap)                # f32 intermediates
        return tiles + weights + biases + temps

    while tm > 8 and vmem_bytes(tm) > 48 * 1024 * 1024:
        tm = max(8, _round_up(tm // 2, 8))
    return tm, vmem_bytes(tm)


@functools.partial(jax.jit,
                   static_argnames=("tm", "single_buffer_weights", "eps", "ffn_act"))
def positionwise_adapted_ffn(x, gamma, beta, w1, b1, w2, b2, wd, bd, wu, bu,
                             *, tm=256, single_buffer_weights=True,
                             eps=1e-6, ffn_act="relu"):
    """x: (B, S, D). Weights pre-transposed to (in, out): w1 (D,F), w2 (F,D),
    wd (D,A), wu (A,D). Biases are 1-D."""
    B, S, D = x.shape
    Fh = w1.shape[1]
    A = wd.shape[1]
    M = B * S

    # Lane-dense padding of all feature dims (multiple of 128).
    Dp = _round_up(D, 128)
    Fp = _round_up(Fh, 128)
    Ap = _round_up(A, 128)

    wbuf = 1 if single_buffer_weights else 2
    tm_eff, vmem_est = _pick_row_tile(M, tm, Dp, Fp, Ap,
                                      x.dtype.itemsize, w1.dtype.itemsize, wbuf)
    Mp = _round_up(M, tm_eff)

    # Zero-pad to tile-aligned, lane-dense shapes (no divisibility asserts).
    x2d = jnp.pad(x.reshape(M, D), ((0, Mp - M), (0, Dp - D)))
    gamma_p = jnp.pad(gamma.reshape(1, D), ((0, 0), (0, Dp - D)))
    beta_p = jnp.pad(beta.reshape(1, D), ((0, 0), (0, Dp - D)))
    w1_p = jnp.pad(w1, ((0, Dp - D), (0, Fp - Fh)))
    b1_p = jnp.pad(b1.reshape(1, Fh), ((0, 0), (0, Fp - Fh)))
    w2_p = jnp.pad(w2, ((0, Fp - Fh), (0, Dp - D)))
    b2_p = jnp.pad(b2.reshape(1, D), ((0, 0), (0, Dp - D)))
    wd_p = jnp.pad(wd, ((0, Dp - D), (0, Ap - A)))
    bd_p = jnp.pad(bd.reshape(1, A), ((0, 0), (0, Ap - A)))
    wu_p = jnp.pad(wu, ((0, Ap - A), (0, Dp - D)))
    bu_p = jnp.pad(bu.reshape(1, D), ((0, 0), (0, Dp - D)))

    vmem_limit = int(min(max(int(vmem_est * 1.5), 32 * 1024 * 1024),
                         64 * 1024 * 1024))

    kernel = functools.partial(_ffn_adapter_kernel,
                               d_model=D, eps=eps, ffn_act=ffn_act)

    out = pl.pallas_call(
        kernel,
        out_shape=jax.ShapeDtypeStruct((Mp, Dp), x.dtype),
        grid_spec=pltpu.PrefetchScalarGridSpec(
            num_scalar_prefetch=0,
            grid=(Mp // tm_eff,),
            in_specs=[
                pl.BlockSpec((tm_eff, Dp), lambda i: (i, 0)),        # x rows
                _resident_spec((1, Dp), single_buffer_weights),      # ln gamma
                _resident_spec((1, Dp), single_buffer_weights),      # ln beta
                _resident_spec((Dp, Fp), single_buffer_weights),     # w_1
                _resident_spec((1, Fp), single_buffer_weights),      # b_1
                _resident_spec((Fp, Dp), single_buffer_weights),     # w_2
                _resident_spec((1, Dp), single_buffer_weights),      # b_2
                _resident_spec((Dp, Ap), single_buffer_weights),     # down_project_w
                _resident_spec((1, Ap), single_buffer_weights),      # down_project_b
                _resident_spec((Ap, Dp), single_buffer_weights),     # up_project_w
                _resident_spec((1, Dp), single_buffer_weights),      # up_project_b
            ],
            out_specs=pl.BlockSpec((tm_eff, Dp), lambda i: (i, 0)),
        ),
        compiler_params=pltpu.CompilerParams(
            dimension_semantics=("parallel",),
            vmem_limit_bytes=vmem_limit,
        ),
    )(x2d, gamma_p, beta_p, w1_p, b1_p, w2_p, b2_p, wd_p, bd_p, wu_p, bu_p)

    return out[:M, :D].reshape(B, S, D)


def init_params(key, d_model, d_ff, adapter_size, adapter_init_range):
    """Mirrors the PyTorch module: LayerNorm gamma=1/beta=0, Linear biases=0,
    adapter weights ~ N(0, adapter_initializer_range). Weights are built directly
    in (in, out) layout for x @ W matmuls."""
    k1, k2, k3, k4 = jax.random.split(key, 4)
    gamma = jnp.ones((d_model,), jnp.float32)
    beta = jnp.zeros((d_model,), jnp.float32)
    w1 = jax.random.normal(k1, (d_model, d_ff), jnp.float32) * 0.1
    b1 = jnp.zeros((d_ff,), jnp.float32)
    w2 = jax.random.normal(k2, (d_ff, d_model), jnp.float32) * 0.1
    b2 = jnp.zeros((d_model,), jnp.float32)
    wd = jax.random.normal(k3, (d_model, adapter_size), jnp.float32) * adapter_init_range
    bd = jnp.zeros((adapter_size,), jnp.float32)
    wu = jax.random.normal(k4, (adapter_size, d_model), jnp.float32) * adapter_init_range
    bu = jnp.zeros((d_model,), jnp.float32)
    return gamma, beta, w1, b1, w2, b2, wd, bd, wu, bu


def reference(x, gamma, beta, w1, b1, w2, b2, wd, bd, wu, bu, eps=1e-6):
    """Pure-JAX reference of PositionwiseAdaptedFeedForward.forward (eval mode)."""
    xf = x.astype(jnp.float32)
    mean = xf.mean(-1, keepdims=True)
    var = ((xf - mean) ** 2).mean(-1, keepdims=True)
    h = (xf - mean) / jnp.sqrt(var + eps) * gamma + beta
    inter = jnp.maximum(h @ w1 + b1, 0.0)           # actv = ReLU, dropout_1 = id
    ffn = inter @ w2 + b2                           # dropout_2 = id
    down = jnp.maximum(ffn @ wd + bd, 0.0)          # Adapter_func (F.relu)
    up = down @ wu + bu
    return (ffn + up + xf).astype(x.dtype)          # adapter residual + outer residual


if __name__ == "__main__":
    # AdapterConfig(hidden_size=32, adapter_size=16, adapter_act="gelu",
    #               adapter_initializer_range=0.02); FFN d_model=32, d_ff=64.
    batch, seq = 2, 8
    d_model, d_ff, adapter_size = 32, 64, 16
    adapter_init_range = 0.02

    key = jax.random.PRNGKey(0)
    k_x, k_p = jax.random.split(key)
    x = jax.random.normal(k_x, (batch, seq, d_model), jnp.float32)
    params = init_params(k_p, d_model, d_ff, adapter_size, adapter_init_range)

    try:
        out = positionwise_adapted_ffn(x, *params, tm=256, single_buffer_weights=True)
        out = jax.block_until_ready(out)
    except Exception:
        # Fallback if this JAX build rejects single-buffered pipeline_mode.
        out = positionwise_adapted_ffn(x, *params, tm=256, single_buffer_weights=False)
        out = jax.block_until_ready(out)

    ref = reference(x, *params)
    assert out.shape == x.shape
    assert jnp.allclose(out, ref, atol=5e-4, rtol=5e-4), "mismatch vs reference"

    print("KERNEL_OK")
</pallas_src>

<mosaic_0001>
module attributes {stable_mosaic.version = 11 : i64} {
  func.func @_ffn_adapter_kernel(%arg0: i32, %arg1: memref<8x128xf32, #tpu.memory_space<vmem>>, %arg2: memref<1x128xf32, #tpu.memory_space<vmem>>, %arg3: memref<1x128xf32, #tpu.memory_space<vmem>>, %arg4: memref<128x128xf32, #tpu.memory_space<vmem>>, %arg5: memref<1x128xf32, #tpu.memory_space<vmem>>, %arg6: memref<128x128xf32, #tpu.memory_space<vmem>>, %arg7: memref<1x128xf32, #tpu.memory_space<vmem>>, %arg8: memref<128x128xf32, #tpu.memory_space<vmem>>, %arg9: memref<1x128xf32, #tpu.memory_space<vmem>>, %arg10: memref<128x128xf32, #tpu.memory_space<vmem>>, %arg11: memref<1x128xf32, #tpu.memory_space<vmem>>, %arg12: memref<8x128xf32, #tpu.memory_space<vmem>>) attributes {dimension_semantics = [#tpu.dimension_semantics<parallel>], iteration_bounds = array<i64: 2>, scalar_prefetch = 0 : i64, scratch_operands = 0 : i64, tpu.core_type = #tpu.core_type<tc>, window_params = [{transform_indices = @transform_0, window_bounds = array<i64: 8, 128>}, {pipeline_mode = #tpu.pipeline_mode<synchronous>, transform_indices = @transform_1, window_bounds = array<i64: 1, 128>}, {pipeline_mode = #tpu.pipeline_mode<synchronous>, transform_indices = @transform_2, window_bounds = array<i64: 1, 128>}, {pipeline_mode = #tpu.pipeline_mode<synchronous>, transform_indices = @transform_3, window_bounds = array<i64: 128, 128>}, {pipeline_mode = #tpu.pipeline_mode<synchronous>, transform_indices = @transform_4, window_bounds = array<i64: 1, 128>}, {pipeline_mode = #tpu.pipeline_mode<synchronous>, transform_indices = @transform_5, window_bounds = array<i64: 128, 128>}, {pipeline_mode = #tpu.pipeline_mode<synchronous>, transform_indices = @transform_6, window_bounds = array<i64: 1, 128>}, {pipeline_mode = #tpu.pipeline_mode<synchronous>, transform_indices = @transform_7, window_bounds = array<i64: 128, 128>}, {pipeline_mode = #tpu.pipeline_mode<synchronous>, transform_indices = @transform_8, window_bounds = array<i64: 1, 128>}, {pipeline_mode = #tpu.pipeline_mode<synchronous>, transform_indices = @transform_9, window_bounds = array<i64: 128, 128>}, {pipeline_mode = #tpu.pipeline_mode<synchronous>, transform_indices = @transform_10, window_bounds = array<i64: 1, 128>}, {transform_indices = @transform_11, window_bounds = array<i64: 8, 128>}]} {
    %c0 = arith.constant 0 : index
    %c0_0 = arith.constant 0 : index
    %0 = vector.load %arg1[%c0, %c0_0] : memref<8x128xf32, #tpu.memory_space<vmem>>, vector<8x128xf32>
    %cst = arith.constant dense<0.000000e+00> : vector<8xf32>
    %1 = vector.multi_reduction <add>, %0, %cst [1] : vector<8x128xf32> to vector<8xf32>
    %2 = vector.shape_cast %1 : vector<8xf32> to vector<8x1xf32>
    %cst_1 = arith.constant 3.125000e-02 : f32
    %3 = vector.broadcast %cst_1 : f32 to vector<8x1xf32>
    %4 = arith.mulf %2, %3 : vector<8x1xf32>
    %5 = tpu.iota {dimensions = array<i32: 1>} : vector<8x128xi32>
    %c32_i32 = arith.constant 32 : i32
    %6 = vector.broadcast %c32_i32 : i32 to vector<8x128xi32>
    %7 = arith.cmpi slt, %5, %6 : vector<8x128xi32>
    %8 = vector.broadcast %4 : vector<8x1xf32> to vector<8x128xf32>
    %9 = arith.subf %0, %8 : vector<8x128xf32>
    %cst_2 = arith.constant 0.000000e+00 : f32
    %10 = vector.broadcast %cst_2 : f32 to vector<8x128xf32>
    %11 = arith.select %7, %9, %10 : vector<8x128xi1>, vector<8x128xf32>
    %12 = arith.mulf %11, %11 : vector<8x128xf32>
    %cst_3 = arith.constant dense<0.000000e+00> : vector<8xf32>
    %13 = vector.multi_reduction <add>, %12, %cst_3 [1] : vector<8x128xf32> to vector<8xf32>
    %14 = vector.shape_cast %13 : vector<8xf32> to vector<8x1xf32>
    %cst_4 = arith.constant 3.125000e-02 : f32
    %15 = vector.broadcast %cst_4 : f32 to vector<8x1xf32>
    %16 = arith.mulf %14, %15 : vector<8x1xf32>
    %c0_5 = arith.constant 0 : index
    %c0_6 = arith.constant 0 : index
    %17 = vector.load %arg2[%c0_5, %c0_6] : memref<1x128xf32, #tpu.memory_space<vmem>>, vector<1x128xf32>
    %c0_7 = arith.constant 0 : index
    %c0_8 = arith.constant 0 : index
    %18 = vector.load %arg3[%c0_7, %c0_8] : memref<1x128xf32, #tpu.memory_space<vmem>>, vector<1x128xf32>
    %cst_9 = arith.constant 9.99999997E-7 : f32
    %19 = vector.broadcast %cst_9 : f32 to vector<8x1xf32>
    %20 = arith.addf %16, %19 : vector<8x1xf32>
    %21 = math.rsqrt %20 : vector<8x1xf32>
    %22 = vector.broadcast %21 : vector<8x1xf32> to vector<8x128xf32>
    %23 = arith.mulf %11, %22 : vector<8x128xf32>
    %24 = vector.broadcast %17 : vector<1x128xf32> to vector<8x128xf32>
    %25 = arith.mulf %23, %24 : vector<8x128xf32>
    %26 = vector.broadcast %18 : vector<1x128xf32> to vector<8x128xf32>
    %27 = arith.addf %25, %26 : vector<8x128xf32>
    %c0_10 = arith.constant 0 : index
    %c0_11 = arith.constant 0 : index
    %28 = vector.load %arg5[%c0_10, %c0_11] : memref<1x128xf32, #tpu.memory_space<vmem>>, vector<1x128xf32>
    %c0_12 = arith.constant 0 : index
    %c0_13 = arith.constant 0 : index
    %29 = vector.load %arg7[%c0_12, %c0_13] : memref<1x128xf32, #tpu.memory_space<vmem>>, vector<1x128xf32>
    %c0_14 = arith.constant 0 : index
    %c0_15 = arith.constant 0 : index
    %30 = vector.load %arg4[%c0_14, %c0_15] : memref<128x128xf32, #tpu.memory_space<vmem>>, vector<128x128xf32>
    %cst_16 = arith.constant dense<0.000000e+00> : vector<8x128xf32>
    %31 = tpu.matmul %27, %30, %cst_16 {dimension_numbers = #tpu.dot_dimension_numbers<[1], [0], [0], [1], [0, 0, 1, 1], [], []>} : vector<8x128xf32>, vector<128x128xf32>, vector<8x128xf32> -> vector<8x128xf32>
    %32 = vector.broadcast %28 : vector<1x128xf32> to vector<8x128xf32>
    %33 = arith.addf %31, %32 : vector<8x128xf32>
    %cst_17 = arith.constant 0.000000e+00 : f32
    %34 = vector.broadcast %cst_17 : f32 to vector<8x128xf32>
    %35 = arith.maximumf %33, %34 : vector<8x128xf32>
    %c0_18 = arith.constant 0 : index
    %c0_19 = arith.constant 0 : index
    %36 = vector.load %arg6[%c0_18, %c0_19] : memref<128x128xf32, #tpu.memory_space<vmem>>, vector<128x128xf32>
    %cst_20 = arith.constant dense<0.000000e+00> : vector<8x128xf32>
    %37 = tpu.matmul %35, %36, %cst_20 {dimension_numbers = #tpu.dot_dimension_numbers<[1], [0], [0], [1], [0, 0, 1, 1], [], []>} : vector<8x128xf32>, vector<128x128xf32>, vector<8x128xf32> -> vector<8x128xf32>
    %38 = vector.broadcast %29 : vector<1x128xf32> to vector<8x128xf32>
    %39 = arith.addf %37, %38 : vector<8x128xf32>
    %c0_21 = arith.constant 0 : index
    %c0_22 = arith.constant 0 : index
    %40 = vector.load %arg9[%c0_21, %c0_22] : memref<1x128xf32, #tpu.memory_space<vmem>>, vector<1x128xf32>
    %c0_23 = arith.constant 0 : index
    %c0_24 = arith.constant 0 : index
    %41 = vector.load %arg11[%c0_23, %c0_24] : memref<1x128xf32, #tpu.memory_space<vmem>>, vector<1x128xf32>
    %c0_25 = arith.constant 0 : index
    %c0_26 = arith.constant 0 : index
    %42 = vector.load %arg8[%c0_25, %c0_26] : memref<128x128xf32, #tpu.memory_space<vmem>>, vector<128x128xf32>
    %cst_27 = arith.constant dense<0.000000e+00> : vector<8x128xf32>
    %43 = tpu.matmul %39, %42, %cst_27 {dimension_numbers = #tpu.dot_dimension_numbers<[1], [0], [0], [1], [0, 0, 1, 1], [], []>} : vector<8x128xf32>, vector<128x128xf32>, vector<8x128xf32> -> vector<8x128xf32>
    %44 = vector.broadcast %40 : vector<1x128xf32> to vector<8x128xf32>
    %45 = arith.addf %43, %44 : vector<8x128xf32>
    %cst_28 = arith.constant 0.000000e+00 : f32
    %46 = vector.broadcast %cst_28 : f32 to vector<8x128xf32>
    %47 = arith.maximumf %45, %46 : vector<8x128xf32>
    %c0_29 = arith.constant 0 : index
    %c0_30 = arith.constant 0 : index
    %48 = vector.load %arg10[%c0_29, %c0_30] : memref<128x128xf32, #tpu.memory_space<vmem>>, vector<128x128xf32>
    %cst_31 = arith.constant dense<0.000000e+00> : vector<8x128xf32>
    %49 = tpu.matmul %47, %48, %cst_31 {dimension_numbers = #tpu.dot_dimension_numbers<[1], [0], [0], [1], [0, 0, 1, 1], [], []>} : vector<8x128xf32>, vector<128x128xf32>, vector<8x128xf32> -> vector<8x128xf32>
    %50 = vector.broadcast %41 : vector<1x128xf32> to vector<8x128xf32>
    %51 = arith.addf %49, %50 : vector<8x128xf32>
    %52 = arith.addf %39, %51 : vector<8x128xf32>
    %53 = arith.addf %52, %0 : vector<8x128xf32>
    %c0_32 = arith.constant 0 : index
    %c0_33 = arith.constant 0 : index
    %54 = vector.load %arg12[%c0_32, %c0_33] : memref<8x128xf32, #tpu.memory_space<vmem>>, vector<8x128xf32>
    tpu.vector_store %arg12[%c0_32, %c0_33], %53 {strides = array<i32>} : memref<8x128xf32, #tpu.memory_space<vmem>>, vector<8x128xf32>,
    return
  }
  func.func @transform_0(%arg0: i32) -> (i32, i32) {
    %c0_i32 = arith.constant 0 : i32
    %c0_i32_0 = arith.constant 0 : i32
    return %arg0, %c0_i32 : i32, i32
  }
  func.func @transform_1(%arg0: i32) -> (i32, i32) {
    %c0_i32 = arith.constant 0 : i32
    %c0_i32_0 = arith.constant 0 : i32
    %c0_i32_1 = arith.constant 0 : i32
    return %c0_i32, %c0_i32_0 : i32, i32
  }
  func.func @transform_2(%arg0: i32) -> (i32, i32) {
    %c0_i32 = arith.constant 0 : i32
    %c0_i32_0 = arith.constant 0 : i32
    %c0_i32_1 = arith.constant 0 : i32
    return %c0_i32, %c0_i32_0 : i32, i32
  }
  func.func @transform_3(%arg0: i32) -> (i32, i32) {
    %c0_i32 = arith.constant 0 : i32
    %c0_i32_0 = arith.constant 0 : i32
    %c0_i32_1 = arith.constant 0 : i32
    return %c0_i32, %c0_i32_0 : i32, i32
  }
  func.func @transform_4(%arg0: i32) -> (i32, i32) {
    %c0_i32 = arith.constant 0 : i32
    %c0_i32_0 = arith.constant 0 : i32
    %c0_i32_1 = arith.constant 0 : i32
    return %c0_i32, %c0_i32_0 : i32, i32
  }
  func.func @transform_5(%arg0: i32) -> (i32, i32) {
    %c0_i32 = arith.constant 0 : i32
    %c0_i32_0 = arith.constant 0 : i32
    %c0_i32_1 = arith.constant 0 : i32
    return %c0_i32, %c0_i32_0 : i32, i32
  }
  func.func @transform_6(%arg0: i32) -> (i32, i32) {
    %c0_i32 = arith.constant 0 : i32
    %c0_i32_0 = arith.constant 0 : i32
    %c0_i32_1 = arith.constant 0 : i32
    return %c0_i32, %c0_i32_0 : i32, i32
  }
  func.func @transform_7(%arg0: i32) -> (i32, i32) {
    %c0_i32 = arith.constant 0 : i32
    %c0_i32_0 = arith.constant 0 : i32
    %c0_i32_1 = arith.constant 0 : i32
    return %c0_i32, %c0_i32_0 : i32, i32
  }
  func.func @transform_8(%arg0: i32) -> (i32, i32) {
    %c0_i32 = arith.constant 0 : i32
    %c0_i32_0 = arith.constant 0 : i32
    %c0_i32_1 = arith.constant 0 : i32
    return %c0_i32, %c0_i32_0 : i32, i32
  }
  func.func @transform_9(%arg0: i32) -> (i32, i32) {
    %c0_i32 = arith.constant 0 : i32
    %c0_i32_0 = arith.constant 0 : i32
    %c0_i32_1 = arith.constant 0 : i32
    return %c0_i32, %c0_i32_0 : i32, i32
  }
  func.func @transform_10(%arg0: i32) -> (i32, i32) {
    %c0_i32 = arith.constant 0 : i32
    %c0_i32_0 = arith.constant 0 : i32
    %c0_i32_1 = arith.constant 0 : i32
    return %c0_i32, %c0_i32_0 : i32, i32
  }
  func.func @transform_11(%arg0: i32) -> (i32, i32) {
    %c0_i32 = arith.constant 0 : i32
    %c0_i32_0 = arith.constant 0 : i32
    return %arg0, %c0_i32 : i32, i32
  }
}

module attributes {stable_mosaic.version = 11 : i64} {
  func.func @_ffn_adapter_kernel(%arg0: i32, %arg1: memref<8x128xf32, #tpu.memory_space<vmem>>, %arg2: memref<1x128xf32, #tpu.memory_space<vmem>>, %arg3: memref<1x128xf32, #tpu.memory_space<vmem>>, %arg4: memref<128x128xf32, #tpu.memory_space<vmem>>, %arg5: memref<1x128xf32, #tpu.memory_space<vmem>>, %arg6: memref<128x128xf32, #tpu.memory_space<vmem>>, %arg7: memref<1x128xf32, #tpu.memory_space<vmem>>, %arg8: memref<128x128xf32, #tpu.memory_space<vmem>>, %arg9: memref<1x128xf32, #tpu.memory_space<vmem>>, %arg10: memref<128x128xf32, #tpu.memory_space<vmem>>, %arg11: memref<1x128xf32, #tpu.memory_space<vmem>>, %arg12: memref<8x128xf32, #tpu.memory_space<vmem>>) attributes {dimension_semantics = [#tpu.dimension_semantics<parallel>], iteration_bounds = array<i64: 2>, scalar_prefetch = 0 : i64, scratch_operands = 0 : i64, tpu.core_type = #tpu.core_type<tc>, window_params = [{transform_indices = @transform_0, window_bounds = array<i64: 8, 128>}, {pipeline_mode = #tpu.pipeline_mode<synchronous>, transform_indices = @transform_1, window_bounds = array<i64: 1, 128>}, {pipeline_mode = #tpu.pipeline_mode<synchronous>, transform_indices = @transform_2, window_bounds = array<i64: 1, 128>}, {pipeline_mode = #tpu.pipeline_mode<synchronous>, transform_indices = @transform_3, window_bounds = array<i64: 128, 128>}, {pipeline_mode = #tpu.pipeline_mode<synchronous>, transform_indices = @transform_4, window_bounds = array<i64: 1, 128>}, {pipeline_mode = #tpu.pipeline_mode<synchronous>, transform_indices = @transform_5, window_bounds = array<i64: 128, 128>}, {pipeline_mode = #tpu.pipeline_mode<synchronous>, transform_indices = @transform_6, window_bounds = array<i64: 1, 128>}, {pipeline_mode = #tpu.pipeline_mode<synchronous>, transform_indices = @transform_7, window_bounds = array<i64: 128, 128>}, {pipeline_mode = #tpu.pipeline_mode<synchronous>, transform_indices = @transform_8, window_bounds = array<i64: 1, 128>}, {pipeline_mode = #tpu.pipeline_mode<synchronous>, transform_indices = @transform_9, window_bounds = array<i64: 128, 128>}, {pipeline_mode = #tpu.pipeline_mode<synchronous>, transform_indices = @transform_10, window_bounds = array<i64: 1, 128>}, {transform_indices = @transform_11, window_bounds = array<i64: 8, 128>}]} {
    %c0 = arith.constant 0 : index
    %c0_0 = arith.constant 0 : index
    %0 = vector.load %arg1[%c0, %c0_0] : memref<8x128xf32, #tpu.memory_space<vmem>>, vector<8x128xf32>
    %cst = arith.constant dense<0.000000e+00> : vector<8xf32>
    %1 = vector.multi_reduction <add>, %0, %cst [1] : vector<8x128xf32> to vector<8xf32>
    %2 = vector.shape_cast %1 : vector<8xf32> to vector<8x1xf32>
    %cst_1 = arith.constant 3.125000e-02 : f32
    %3 = vector.broadcast %cst_1 : f32 to vector<8x1xf32>
    %4 = arith.mulf %2, %3 : vector<8x1xf32>
    %5 = tpu.iota {dimensions = array<i32: 1>} : vector<8x128xi32>
    %c32_i32 = arith.constant 32 : i32
    %6 = vector.broadcast %c32_i32 : i32 to vector<8x128xi32>
    %7 = arith.cmpi slt, %5, %6 : vector<8x128xi32>
    %8 = vector.broadcast %4 : vector<8x1xf32> to vector<8x128xf32>
    %9 = arith.subf %0, %8 : vector<8x128xf32>
    %cst_2 = arith.constant 0.000000e+00 : f32
    %10 = vector.broadcast %cst_2 : f32 to vector<8x128xf32>
    %11 = arith.select %7, %9, %10 : vector<8x128xi1>, vector<8x128xf32>
    %12 = arith.mulf %11, %11 : vector<8x128xf32>
    %cst_3 = arith.constant dense<0.000000e+00> : vector<8xf32>
    %13 = vector.multi_reduction <add>, %12, %cst_3 [1] : vector<8x128xf32> to vector<8xf32>
    %14 = vector.shape_cast %13 : vector<8xf32> to vector<8x1xf32>
    %cst_4 = arith.constant 3.125000e-02 : f32
    %15 = vector.broadcast %cst_4 : f32 to vector<8x1xf32>
    %16 = arith.mulf %14, %15 : vector<8x1xf32>
    %c0_5 = arith.constant 0 : index
    %c0_6 = arith.constant 0 : index
    %17 = vector.load %arg2[%c0_5, %c0_6] : memref<1x128xf32, #tpu.memory_space<vmem>>, vector<1x128xf32>
    %c0_7 = arith.constant 0 : index
    %c0_8 = arith.constant 0 : index
    %18 = vector.load %arg3[%c0_7, %c0_8] : memref<1x128xf32, #tpu.memory_space<vmem>>, vector<1x128xf32>
    %cst_9 = arith.constant 9.99999997E-7 : f32
    %19 = vector.broadcast %cst_9 : f32 to vector<8x1xf32>
    %20 = arith.addf %16, %19 : vector<8x1xf32>
    %21 = math.rsqrt %20 : vector<8x1xf32>
    %22 = vector.broadcast %21 : vector<8x1xf32> to vector<8x128xf32>
    %23 = arith.mulf %11, %22 : vector<8x128xf32>
    %24 = vector.broadcast %17 : vector<1x128xf32> to vector<8x128xf32>
    %25 = arith.mulf %23, %24 : vector<8x128xf32>
    %26 = vector.broadcast %18 : vector<1x128xf32> to vector<8x128xf32>
    %27 = arith.addf %25, %26 : vector<8x128xf32>
    %c0_10 = arith.constant 0 : index
    %c0_11 = arith.constant 0 : index
    %28 = vector.load %arg5[%c0_10, %c0_11] : memref<1x128xf32, #tpu.memory_space<vmem>>, vector<1x128xf32>
    %c0_12 = arith.constant 0 : index
    %c0_13 = arith.constant 0 : index
    %29 = vector.load %arg7[%c0_12, %c0_13] : memref<1x128xf32, #tpu.memory_space<vmem>>, vector<1x128xf32>
    %c0_14 = arith.constant 0 : index
    %c0_15 = arith.constant 0 : index
    %30 = vector.load %arg4[%c0_14, %c0_15] : memref<128x128xf32, #tpu.memory_space<vmem>>, vector<128x128xf32>
    %cst_16 = arith.constant dense<0.000000e+00> : vector<8x128xf32>
    %31 = tpu.matmul %27, %30, %cst_16 {dimension_numbers = #tpu.dot_dimension_numbers<[1], [0], [0], [1], [0, 0, 1, 1], [], []>} : vector<8x128xf32>, vector<128x128xf32>, vector<8x128xf32> -> vector<8x128xf32>
    %32 = vector.broadcast %28 : vector<1x128xf32> to vector<8x128xf32>
    %33 = arith.addf %31, %32 : vector<8x128xf32>
    %cst_17 = arith.constant 0.000000e+00 : f32
    %34 = vector.broadcast %cst_17 : f32 to vector<8x128xf32>
    %35 = arith.maximumf %33, %34 : vector<8x128xf32>
    %c0_18 = arith.constant 0 : index
    %c0_19 = arith.constant 0 : index
    %36 = vector.load %arg6[%c0_18, %c0_19] : memref<128x128xf32, #tpu.memory_space<vmem>>, vector<128x128xf32>
    %cst_20 = arith.constant dense<0.000000e+00> : vector<8x128xf32>
    %37 = tpu.matmul %35, %36, %cst_20 {dimension_numbers = #tpu.dot_dimension_numbers<[1], [0], [0], [1], [0, 0, 1, 1], [], []>} : vector<8x128xf32>, vector<128x128xf32>, vector<8x128xf32> -> vector<8x128xf32>
    %38 = vector.broadcast %29 : vector<1x128xf32> to vector<8x128xf32>
    %39 = arith.addf %37, %38 : vector<8x128xf32>
    %c0_21 = arith.constant 0 : index
    %c0_22 = arith.constant 0 : index
    %40 = vector.load %arg9[%c0_21, %c0_22] : memref<1x128xf32, #tpu.memory_space<vmem>>, vector<1x128xf32>
    %c0_23 = arith.constant 0 : index
    %c0_24 = arith.constant 0 : index
    %41 = vector.load %arg11[%c0_23, %c0_24] : memref<1x128xf32, #tpu.memory_space<vmem>>, vector<1x128xf32>
    %c0_25 = arith.constant 0 : index
    %c0_26 = arith.constant 0 : index
    %42 = vector.load %arg8[%c0_25, %c0_26] : memref<128x128xf32, #tpu.memory_space<vmem>>, vector<128x128xf32>
    %cst_27 = arith.constant dense<0.000000e+00> : vector<8x128xf32>
    %43 = tpu.matmul %39, %42, %cst_27 {dimension_numbers = #tpu.dot_dimension_numbers<[1], [0], [0], [1], [0, 0, 1, 1], [], []>} : vector<8x128xf32>, vector<128x128xf32>, vector<8x128xf32> -> vector<8x128xf32>
    %44 = vector.broadcast %40 : vector<1x128xf32> to vector<8x128xf32>
    %45 = arith.addf %43, %44 : vector<8x128xf32>
    %cst_28 = arith.constant 0.000000e+00 : f32
    %46 = vector.broadcast %cst_28 : f32 to vector<8x128xf32>
    %47 = arith.maximumf %45, %46 : vector<8x128xf32>
    %c0_29 = arith.constant 0 : index
    %c0_30 = arith.constant 0 : index
    %48 = vector.load %arg10[%c0_29, %c0_30] : memref<128x128xf32, #tpu.memory_space<vmem>>, vector<128x128xf32>
    %cst_31 = arith.constant dense<0.000000e+00> : vector<8x128xf32>
    %49 = tpu.matmul %47, %48, %cst_31 {dimension_numbers = #tpu.dot_dimension_numbers<[1], [0], [0], [1], [0, 0, 1, 1], [], []>} : vector<8x128xf32>, vector<128x128xf32>, vector<8x128xf32> -> vector<8x128xf32>
    %50 = vector.broadcast %41 : vector<1x128xf32> to vector<8x128xf32>
    %51 = arith.addf %49, %50 : vector<8x128xf32>
    %52 = arith.addf %39, %51 : vector<8x128xf32>
    %53 = arith.addf %52, %0 : vector<8x128xf32>
    %c0_32 = arith.constant 0 : index
    %c0_33 = arith.constant 0 : index
    %54 = vector.load %arg12[%c0_32, %c0_33] : memref<8x128xf32, #tpu.memory_space<vmem>>, vector<8x128xf32>
    tpu.vector_store %arg12[%c0_32, %c0_33], %53 {strides = array<i32>} : memref<8x128xf32, #tpu.memory_space<vmem>>, vector<8x128xf32>,
    return
  }
  func.func @transform_0(%arg0: i32) -> (i32, i32) {
    %c0_i32 = arith.constant 0 : i32
    %c0_i32_0 = arith.constant 0 : i32
    return %arg0, %c0_i32 : i32, i32
  }
  func.func @transform_1(%arg0: i32) -> (i32, i32) {
    %c0_i32 = arith.constant 0 : i32
    %c0_i32_0 = arith.constant 0 : i32
    %c0_i32_1 = arith.constant 0 : i32
    return %c0_i32, %c0_i32_0 : i32, i32
  }
  func.func @transform_2(%arg0: i32) -> (i32, i32) {
    %c0_i32 = arith.constant 0 : i32
    %c0_i32_0 = arith.constant 0 : i32
    %c0_i32_1 = arith.constant 0 : i32
    return %c0_i32, %c0_i32_0 : i32, i32
  }
  func.func @transform_3(%arg0: i32) -> (i32, i32) {
    %c0_i32 = arith.constant 0 : i32
    %c0_i32_0 = arith.constant 0 : i32
    %c0_i32_1 = arith.constant 0 : i32
    return %c0_i32, %c0_i32_0 : i32, i32
  }
  func.func @transform_4(%arg0: i32) -> (i32, i32) {
    %c0_i32 = arith.constant 0 : i32
    %c0_i32_0 = arith.constant 0 : i32
    %c0_i32_1 = arith.constant 0 : i32
    return %c0_i32, %c0_i32_0 : i32, i32
  }
  func.func @transform_5(%arg0: i32) -> (i32, i32) {
    %c0_i32 = arith.constant 0 : i32
    %c0_i32_0 = arith.constant 0 : i32
    %c0_i32_1 = arith.constant 0 : i32
    return %c0_i32, %c0_i32_0 : i32, i32
  }
  func.func @transform_6(%arg0: i32) -> (i32, i32) {
    %c0_i32 = arith.constant 0 : i32
    %c0_i32_0 = arith.constant 0 : i32
    %c0_i32_1 = arith.constant 0 : i32
    return %c0_i32, %c0_i32_0 : i32, i32
  }
  func.func @transform_7(%arg0: i32) -> (i32, i32) {
    %c0_i32 = arith.constant 0 : i32
    %c0_i32_0 = arith.constant 0 : i32
    %c0_i32_1 = arith.constant 0 : i32
    return %c0_i32, %c0_i32_0 : i32, i32
  }
  func.func @transform_8(%arg0: i32) -> (i32, i32) {
    %c0_i32 = arith.constant 0 : i32
    %c0_i32_0 = arith.constant 0 : i32
    %c0_i32_1 = arith.constant 0 : i32
    return %c0_i32, %c0_i32_0 : i32, i32
  }
  func.func @transform_9(%arg0: i32) -> (i32, i32) {
    %c0_i32 = arith.constant 0 : i32
    %c0_i32_0 = arith.constant 0 : i32
    %c0_i32_1 = arith.constant 0 : i32
    return %c0_i32, %c0_i32_0 : i32, i32
  }
  func.func @transform_10(%arg0: i32) -> (i32, i32) {
    %c0_i32 = arith.constant 0 : i32
    %c0_i32_0 = arith.constant 0 : i32
    %c0_i32_1 = arith.constant 0 : i32
    return %c0_i32, %c0_i32_0 : i32, i32
  }
  func.func @transform_11(%arg0: i32) -> (i32, i32) {
    %c0_i32 = arith.constant 0 : i32
    %c0_i32_0 = arith.constant 0 : i32
    return %arg0, %c0_i32 : i32, i32
  }
}

</mosaic_0001>

<bundles_post_ra>
// kernel: positionwise_adapted_ffn.1
= control target key start
LH: loop header
LB: loop body
LE: loop exit
PB: predicated region body
PF: predicated region fallthrough
CT: control target
= control target key end

     0   :  { %s1247_s17 = smov 0   ;;  %s1531_s0 = inlined_call_operand.vmem [shape: f32[16,128], index: 0, kind: input, shape index: {}]   ;;  %s1532_s1 = inlined_call_operand.vmem [shape: f32[1,128], index: 1, kind: input, shape index: {}]   ;;  %s1533_s2 = inlined_call_operand.vmem [shape: f32[1,128], index: 2, kind: input, shape index: {}]   ;;  %s1534_s3 = inlined_call_operand.vmem [shape: f32[128,128], index: 3, kind: input, shape index: {}]   ;;  %s1535_s4 = inlined_call_operand.vmem [shape: f32[1,128], index: 4, kind: input, shape index: {}]   ;;  %s1536_s5 = inlined_call_operand.vmem [shape: f32[128,128], index: 5, kind: input, shape index: {}]   ;;  %s1537_s6 = inlined_call_operand.vmem [shape: f32[1,128], index: 6, kind: input, shape index: {}]   ;;  %s1538_s7 = inlined_call_operand.vmem [shape: f32[128,128], index: 7, kind: input, shape index: {}]   ;;  %s1539_s8 = inlined_call_operand.vmem [shape: f32[1,128], index: 8, kind: input, shape index: {}]   ;;  %s1540_s9 = inlined_call_operand.vmem [shape: f32[128,128], index: 9, kind: input, shape index: {}]   ;;  %s1541_s10 = inlined_call_operand.vmem [shape: f32[1,128], index: 10, kind: input, shape index: {}]   ;;  %s1542_s11 = inlined_call_operand.vmem [shape: f32[16,128], index: 11, kind: output, shape index: {}]  }
   0x1 LB: > { %s844_s18 = sadd.s32 4294967295, %s1182_s17   ;;  %p848_p0 = scmp.ge.s32.totalorder %s1182_s17, 1  ;;  %s1182_s17 = sphi %s1247_s17, %s21_s17  }
   0x2   : > { %p336_p1 = scmp.lt.s32.totalorder %s1182_s17, 3 }
   0x4   : > { %p337_p2 = pnand %p848_p0, %p336_p1 }
   0x5   : > { %p374_p3 = scmp.lt.s32.totalorder (!%p337_p2), %s844_s18, 1  ;;  %v416_v1 = vld [vmem:[%s1534_s3] sm:$0xff] (!%p337_p2)  ;;  %v417_v2 = vld [vmem:[%s1534_s3 + $0x8] sm:$0xff] (!%p337_p2)  ;;  %v418_v3 = vld [vmem:[%s1534_s3 + $0x10] sm:$0xff] (!%p337_p2)  ;;  %v1184_v4 = vmov (!%p337_p2), 0.0|0.0   ;;  %v386_v11 = vlaneseq (!%p337_p2)  ;;  %vm1185_vm1 = vmmov (!%p337_p2), 0  }
   0x6   : > { %340 = sbr.rel (%p337_p2) target bundleno = 1194 (0x4aa), region = 64  ;;  %1067 = vmatprep.subr.bf16.mxu0 (!%p337_p2), %v1184_v4  ;;  %v1068_v5 = vpack.c.bf16 (!%p337_p2), %v417_v2, %v416_v1  ;;  %v419_v6 = vld [vmem:[%s1534_s3 + $0x18] sm:$0xff] (!%p337_p2)  ;;  %1091 = vmatprep.subr.bf16.mxu1 (!%p337_p2), %v1184_v4  ;;  %v420_v8 = vld [vmem:[%s1534_s3 + $0x20] sm:$0xff] (!%p337_p2)  ;;  %v421_v9 = vld [vmem:[%s1534_s3 + $0x28] sm:$0xff] (!%p337_p2)  ;;  %v1186_v26 = vmov (!%p337_p2), 0.0  }
   0x7   : > { %v1071_v7 = vpack.c.bf16 (!%p337_p2), %v419_v6, %v418_v3  ;;  %v1074_v10 = vpack.c.bf16 (!%p337_p2), %v421_v9, %v420_v8  ;;  %v387_v12 = vand.u32 (!%p337_p2), 127, %v386_v11  ;;  %v422_v18 = vld [vmem:[%s1534_s3 + $0x30] sm:$0xff] (!%p337_p2)  ;;  %v423_v19 = vld [vmem:[%s1534_s3 + $0x38] sm:$0xff] (!%p337_p2)  ;;  %v424_v21 = vld [vmem:[%s1534_s3 + $0x40] sm:$0xff] (!%p337_p2)  ;;  %959 = vmatprep.mubr.msk.f32.mxu0 (!%p337_p2), %vm1185_vm1, %v1186_v26  ;;  %994 = vmatprep.mubr.msk.f32.mxu1 (!%p337_p2), %vm1185_vm1, %v1186_v26 }
   0x8   : > { %1069 = vmatpush3.bf16.msra.mxu0 (!%p337_p2), %v1068_v5  ;;  %v1077_v20 = vpack.c.bf16 (!%p337_p2), %v423_v19, %v422_v18  ;;  %v425_v22 = vld [vmem:[%s1534_s3 + $0x48] sm:$0xff] (!%p337_p2)  ;;  %v426_v24 = vld [vmem:[%s1534_s3 + $0x50] sm:$0xff] (!%p337_p2)  ;;  %v427_v25 = vld [vmem:[%s1534_s3 + $0x58] sm:$0xff] (!%p337_p2) }
   0x9   : > { %1070 = vmatprep.subr.bf16.mxu0 (!%p337_p2), %v1184_v4  ;;  %vm388_vm0 = vcmp.lt.s32.totalorder (!%p337_p2), %v387_v12, 32  ;;  %v1080_v23 = vpack.c.bf16 (!%p337_p2), %v425_v22, %v424_v21  ;;  %v1083_v27 = vpack.c.bf16 (!%p337_p2), %v427_v25, %v426_v24  ;;  %v428_v28 = vld [vmem:[%s1534_s3 + $0x60] sm:$0xff] (!%p337_p2)  ;;  %v429_v29 = vld [vmem:[%s1534_s3 + $0x68] sm:$0xff] (!%p337_p2)  ;;  %v430_v31 = vld [vmem:[%s1534_s3 + $0x70] sm:$0xff] (!%p337_p2) }
   0xa   : > { %v1086_v30 = vpack.c.bf16 (!%p337_p2), %v429_v29, %v428_v28  ;;  %v431_v32 = vld [vmem:[%s1534_s3 + $0x78] sm:$0xff] (!%p337_p2)  ;;  %v509_v34 = vld [vmem:[%s1536_s5] sm:$0xff] (!%p337_p2)  ;;  %v510_v35 = vld [vmem:[%s1536_s5 + $0x8] sm:$0xff] (!%p337_p2) }
   0xb   : > { %v1089_v33 = vpack.c.bf16 (!%p337_p2), %v431_v32, %v430_v31  ;;  %v511_v36 = vld [vmem:[%s1536_s5 + $0x10] sm:$0xff] (!%p337_p2)  ;;  %v1092_v37 = vpack.c.bf16 (!%p337_p2), %v510_v35, %v509_v34  ;;  %v512_v38 = vld [vmem:[%s1536_s5 + $0x18] sm:$0xff] (!%p337_p2)  ;;  %v513_v40 = vld [vmem:[%s1536_s5 + $0x20] sm:$0xff] (!%p337_p2) }
   0xc   : > { %1072 = vmatpush3.bf16.msra.mxu0 (!%p337_p2), %v1071_v7  ;;  %v1095_v39 = vpack.c.bf16 (!%p337_p2), %v512_v38, %v511_v36  ;;  %v514_v41 = vld [vmem:[%s1536_s5 + $0x28] sm:$0xff] (!%p337_p2)  ;;  %v515_v43 = vld [vmem:[%s1536_s5 + $0x30] sm:$0xff] (!%p337_p2)  ;;  %v516_v44 = vld [vmem:[%s1536_s5 + $0x38] sm:$0xff] (!%p337_p2) }
   0xd   : > { %s1544_s18 = smov (!%p374_p3, %s844_s18), 1  ;;  %1073 = vmatprep.subr.bf16.mxu0 %v1184_v4  ;;  %1093 = vmatpush3.bf16.msra.mxu1 %v1092_v37  ;;  %v1098_v42 = vpack.c.bf16 %v514_v41, %v513_v40  ;;  %v1101_v45 = vpack.c.bf16 %v516_v44, %v515_v43  ;;  %v517_v46 = vld [vmem:[%s1536_s5 + $0x40] sm:$0xff]  ;;  %v518_v47 = vld [vmem:[%s1536_s5 + $0x48] sm:$0xff]  ;;  %v519_v49 = vld [vmem:[%s1536_s5 + $0x50] sm:$0xff] }
   0xe   : > { %s849_s19 = sshll.u32 %s1544_s18, 3  ;;  %1094 = vmatprep.subr.bf16.mxu1 %v1184_v4  ;;  %v1104_v48 = vpack.c.bf16 %v518_v47, %v517_v46  ;;  %v520_v50 = vld [vmem:[%s1536_s5 + $0x58] sm:$0xff]  ;;  %v521_v52 = vld [vmem:[%s1536_s5 + $0x60] sm:$0xff]  ;;  %v522_v53 = vld [vmem:[%s1536_s5 + $0x68] sm:$0xff] }
   0xf   : > { %s377_s22 = scalar_lea.vmem %s1531_s0, %s849_s19  ;;  %v1107_v51 = vpack.c.bf16 %v520_v50, %v519_v49  ;;  %v1110_v54 = vpack.c.bf16 %v522_v53, %v521_v52  ;;  %v851_v59 = vld [vmem:[%s1532_s1] ss:$0 sm:$0xff]  ;;  %v523_v1 = vld [vmem:[%s1536_s5 + $0x70] sm:$0xff]  ;;  %v524_v2 = vld [vmem:[%s1536_s5 + $0x78] sm:$0xff]  ;;  %s381_s21 = scalar_lea.vmem %s1542_s11, %s849_s19 }
  0x10   : > { %v1263_v0 = vld [vmem:[%s377_s22] sm:$0xff]  ;;  %1075 = vmatpush3.bf16.msra.mxu0 %v1074_v10  ;;  %v1113_v3 = vpack.c.bf16 %v524_v2, %v523_v1  ;;  %v604_v6 = vld [vmem:[%s1538_s7 + $0x8] sm:$0xff]  ;;  %v605_v7 = vld [vmem:[%s1538_s7 + $0x10] sm:$0xff] }
  0x11   : > { %383 = vadd.xlane.f32.xlu0 %v1263_v0  ;;  %1076 = vmatprep.subr.bf16.mxu0 %v1184_v4  ;;  %v852_v61 = vld [vmem:[%s1533_s2] ss:$0 sm:$0xff]  ;;  %v606_v9 = vld [vmem:[%s1538_s7 + $0x18] sm:$0xff]  ;;  %v608_v12 = vld [vmem:[%s1538_s7 + $0x28] sm:$0xff] }
  0x12   : > { %1096 = vmatpush3.bf16.msra.mxu1 %v1095_v39  ;;  %v603_v5 = vld [vmem:[%s1538_s7] sm:$0xff]  ;;  %v1119_v10 = vpack.c.bf16 %v606_v9, %v605_v7  ;;  %v612_v18 = vld [vmem:[%s1538_s7 + $0x48] sm:$0xff]  ;;  %v614_v21 = vld [vmem:[%s1538_s7 + $0x58] sm:$0xff] }
  0x13   : > { %1097 = vmatprep.subr.bf16.mxu1 %v1184_v4  ;;  %v1116_v8 = vpack.c.bf16 %v604_v6, %v603_v5  ;;  %v607_v11 = vld [vmem:[%s1538_s7 + $0x20] sm:$0xff]  ;;  %v616_v24 = vld [vmem:[%s1538_s7 + $0x68] sm:$0xff]  ;;  %v617_v32 = vld [vmem:[%s1538_s7 + $0x70] sm:$0xff] }
  0x14   : > { %1078 = vmatpush3.bf16.msra.mxu0 %v1077_v20  ;;  %v613_v20 = vld [vmem:[%s1538_s7 + $0x50] sm:$0xff]  ;;  %v696_v35 = vld [vmem:[%s1540_s9] sm:$0xff]  ;;  %v697_v36 = vld [vmem:[%s1540_s9 + $0x8] sm:$0xff] }
  0x15   : > { %1079 = vmatprep.subr.bf16.mxu0 %v1184_v4  ;;  %v1131_v22 = vpack.c.bf16 %v614_v21, %v613_v20  ;;  %v1140_v37 = vpack.c.bf16 %v697_v36, %v696_v35  ;;  %v699_v38 = vld [vmem:[%s1540_s9 + $0x18] sm:$0xff]  ;;  %v700_v40 = vld [vmem:[%s1540_s9 + $0x20] sm:$0xff]  ;;  %v701_v41 = vld [vmem:[%s1540_s9 + $0x28] sm:$0xff] }
  0x16   : > { %1099 = vmatpush3.bf16.msra.mxu1 %v1098_v42  ;;  %v1146_v42 = vpack.c.bf16 %v701_v41, %v700_v40  ;;  %v702_v43 = vld [vmem:[%s1540_s9 + $0x30] sm:$0xff]  ;;  %v703_v44 = vld [vmem:[%s1540_s9 + $0x38] sm:$0xff]  ;;  %v704_v46 = vld [vmem:[%s1540_s9 + $0x40] sm:$0xff] }
  0x17   : > { %1100 = vmatprep.subr.bf16.mxu1 %v1184_v4  ;;  %v705_v47 = vld [vmem:[%s1540_s9 + $0x48] sm:$0xff]  ;;  %v706_v49 = vld [vmem:[%s1540_s9 + $0x50] sm:$0xff]  ;;  %v707_v50 = vld [vmem:[%s1540_s9 + $0x58] sm:$0xff] }
  0x18   : > { %1081 = vmatpush3.bf16.msra.mxu0 %v1080_v23  ;;  %v615_v23 = vld [vmem:[%s1538_s7 + $0x60] sm:$0xff]  ;;  %v709_v53 = vld [vmem:[%s1540_s9 + $0x68] sm:$0xff] }
  0x19   : > { %1082 = vmatprep.subr.bf16.mxu0 %v1184_v4  ;;  %v1134_v25 = vpack.c.bf16 %v616_v24, %v615_v23  ;;  %v708_v52 = vld [vmem:[%s1540_s9 + $0x60] sm:$0xff] }
  0x1a   : > { %1102 = vmatpush3.bf16.msra.mxu1 %v1101_v45  ;;  %v1149_v45 = vpack.c.bf16 %v703_v44, %v702_v43 }
  0x1b   : > { %1103 = vmatprep.subr.bf16.mxu1 %v1184_v4 }
  0x1c   : > { %1084 = vmatpush3.bf16.msra.mxu0 %v1083_v27  ;;  %v853_v27 = vld [vmem:[%s1535_s4] ss:$0 sm:$0xff] }
  0x1d   : > { %1085 = vmatprep.subr.bf16.mxu0 %v1184_v4 }
  0x1e   : > { %1105 = vmatpush3.bf16.msra.mxu1 %v1104_v48  ;;  %v1152_v48 = vpack.c.bf16 %v705_v47, %v704_v46 }
  0x1f   : > { %1106 = vmatprep.subr.bf16.mxu1 %v1184_v4 }
  0x20   : > { %1087 = vmatpush3.bf16.msra.mxu0 %v1086_v30 }
  0x21   : > { %1088 = vmatprep.subr.bf16.mxu0 %v1184_v4 }
  0x22   : > { %1108 = vmatpush3.bf16.msra.mxu1 %v1107_v51  ;;  %v1155_v51 = vpack.c.bf16 %v707_v50, %v706_v49 }
  0x23   : > { %1109 = vmatprep.subr.bf16.mxu1 %v1184_v4 }
  0x24   : > { %1090 = vmatpush3.bf16.msra.mxu0 %v1089_v33  ;;  %v618_v33 = vld [vmem:[%s1538_s7 + $0x78] sm:$0xff] }
  0x25   : > { %1115 = vmatprep.subr.bf16.mxu0 %v1184_v4  ;;  %v1137_v34 = vpack.c.bf16 %v618_v33, %v617_v32 }
  0x26   : > { %1111 = vmatpush3.bf16.msra.mxu1 %v1110_v54  ;;  %v1158_v54 = vpack.c.bf16 %v709_v53, %v708_v52 }
  0x27   : > { %1112 = vmatprep.subr.bf16.mxu1 %v1184_v4 }
  0x2a   : > { %1114 = vmatpush3.bf16.msra.mxu1 %v1113_v3  ;;  %v856_v3 = vld [vmem:[%s1541_s10] ss:$0 sm:$0xff] }
  0x2b   : > { %1139 = vmatprep.subr.bf16.mxu1 %v1184_v4 }
  0x9e   : > { %v384_v13 = vpop.xlane.xlu0 %383 }
  0x9f   : > { %v385_v14 = vmul.f32 0.03125, %v384_v13  ;;  %v1122_v13 = vpack.c.bf16 %v608_v12, %v607_v11 }
  0xa1   : > { %v389_v15 = vsub.f32 %v1263_v0, %v385_v14  ;;  %v609_v14 = vld [vmem:[%s1538_s7 + $0x30] sm:$0xff] }
  0xa3   : > { %v1290_v16 = vsel %vm388_vm0, %v389_v15, 0.0  ;;  %v610_v15 = vld [vmem:[%s1538_s7 + $0x38] sm:$0xff] }
  0xa4   : > { %v391_v17 = vmul.f32 %v1290_v16, %v1290_v16 }
  0xa6   : > { %392 = vadd.xlane.f32.xlu0 %v391_v17  ;;  %v611_v17 = vld [vmem:[%s1538_s7 + $0x40] sm:$0xff] }
  0xa7   : > { %v1128_v19 = vpack.c.bf16 %v612_v18, %v611_v17 }
 0x133   : > { %v393_v55 = vpop.xlane.xlu0 %392 }
 0x134   : > { %v394_v56 = vmul.f32 0.03125, %v393_v55  ;;  %v854_v55 = vld [vmem:[%s1537_s6] ss:$0 sm:$0xff] }
 0x136   : > { %v397_v57 = vadd.f32 1e-06, %v394_v56 }
 0x138   : > { %1174 = vrsqrt.f32 %v397_v57 }
 0x142   : > { %v1175_v58 = vpop.eup %1174 }
 0x143   : > { %v399_v60 = vmul.f32 %v1175_v58, %v1290_v16  ;;  %v1125_v16 = vpack.c.bf16 %v610_v15, %v609_v14 }
 0x145   : > { %v406_v62 = vmul.f32 %v851_v59, %v399_v60  ;;  %v710_v59 = vld [vmem:[%s1540_s9 + $0x70] sm:$0xff]  ;;  %v711_v60 = vld [vmem:[%s1540_s9 + $0x78] sm:$0xff] }
 0x147   : > { %v413_v63 = vadd.f32 %v852_v61, %v406_v62  ;;  %v1161_v61 = vpack.c.bf16 %v711_v60, %v710_v59 }
 0x149   : > { %960 = vmatmul.mubr.f32.vlgmr.msra.gmra.mrb[0].mxu0 %v413_v63 }
 0x14a   : > { %1029 = vmatprep.mubr.msk.f32.mxu0 %vm1185_vm1, %v1186_v26  ;;  %1117 = vmatpush3.bf16.msra.mxu0 %v1116_v8 }
 0x14b   : > { %1118 = vmatprep.subr.bf16.mxu0 %v1184_v4 }
 0x14e   : > { %1120 = vmatpush3.bf16.msra.mxu0 %v1119_v10 }
 0x14f   : > { %1121 = vmatprep.subr.bf16.mxu0 %v1184_v4 }
 0x152   : > { %1123 = vmatpush3.bf16.msra.mxu0 %v1122_v13 }
 0x153   : > { %1124 = vmatprep.subr.bf16.mxu0 %v1184_v4 }
 0x156   : > { %1126 = vmatpush3.bf16.msra.mxu0 %v1125_v16 }
 0x157   : > { %1127 = vmatprep.subr.bf16.mxu0 %v1184_v4 }
 0x15a   : > { %1129 = vmatpush3.bf16.msra.mxu0 %v1128_v19 }
 0x15b   : > { %1130 = vmatprep.subr.bf16.mxu0 %v1184_v4 }
 0x15e   : > { %1132 = vmatpush3.bf16.msra.mxu0 %v1131_v22 }
 0x15f   : > { %1133 = vmatprep.subr.bf16.mxu0 %v1184_v4 }
 0x162   : > { %1135 = vmatpush3.bf16.msra.mxu0 %v1134_v25 }
 0x163   : > { %1136 = vmatprep.subr.bf16.mxu0 %v1184_v4 }
 0x166   : > { %1138 = vmatpush3.bf16.msra.mxu0 %v1137_v34 }
 0x21c   : > { %v504_v28 = vpop.f32.mrb[0].mxu0 }
 0x21d   : > { %v505_v29 = vadd.f32 %v853_v27, %v504_v28  ;;  %v961_v30 = vpop.f32.mrb[1].mxu0 }
 0x21f   : > { %v508_v31 = vmax.f32 %v505_v29, 0.0 }
 0x221   : > { %995 = vmatmul.mubr.f32.vlgmr.msra.gmra.mrb[0].mxu1 %v508_v31 }
 0x222   : > { %1064 = vmatprep.mubr.msk.f32.mxu1 %vm1185_vm1, %v1186_v26  ;;  %v698_v26 = vld [vmem:[%s1540_s9 + $0x10] sm:$0xff]  ;;  %1141 = vmatpush3.bf16.msra.mxu1 %v1140_v37 }
 0x223   : > { %v1143_v39 = vpack.c.bf16 %v699_v38, %v698_v26  ;;  %1142 = vmatprep.subr.bf16.mxu1 %v1184_v4 }
 0x226   : > { %1144 = vmatpush3.bf16.msra.mxu1 %v1143_v39 }
 0x227   : > { %1145 = vmatprep.subr.bf16.mxu1 %v1184_v4 }
 0x22a   : > { %1147 = vmatpush3.bf16.msra.mxu1 %v1146_v42 }
 0x22b   : > { %1148 = vmatprep.subr.bf16.mxu1 %v1184_v4 }
 0x22e   : > { %1150 = vmatpush3.bf16.msra.mxu1 %v1149_v45 }
 0x22f   : > { %1151 = vmatprep.subr.bf16.mxu1 %v1184_v4 }
 0x232   : > { %1153 = vmatpush3.bf16.msra.mxu1 %v1152_v48 }
 0x233   : > { %1154 = vmatprep.subr.bf16.mxu1 %v1184_v4 }
 0x236   : > { %1156 = vmatpush3.bf16.msra.mxu1 %v1155_v51 }
 0x237   : > { %1157 = vmatprep.subr.bf16.mxu1 %v1184_v4 }
 0x23a   : > { %1159 = vmatpush3.bf16.msra.mxu1 %v1158_v54 }
 0x23b   : > { %1160 = vmatprep.subr.bf16.mxu1 %v1184_v4  ;;  %v855_v4 = vld [vmem:[%s1539_s8] ss:$0 sm:$0xff] }
 0x23e   : > { %1162 = vmatpush3.bf16.msra.mxu1 %v1161_v61 }
 0x2f4   : > { %v597_v56 = vpop.f32.mrb[0].mxu1 }
 0x2f5   : > { %v598_v57 = vadd.f32 %v854_v55, %v597_v56  ;;  %v996_v58 = vpop.f32.mrb[1].mxu1 }
 0x2f7   : > { %1030 = vmatmul.mubr.f32.vlgmr.msra.gmra.mrb[2].mxu0 %v598_v57 }
 0x3ca   : > { %v691_v62 = vpop.f32.mrb[2].mxu0 }
 0x3cb   : > { %v692_v63 = vadd.f32 %v855_v4, %v691_v62  ;;  %v1031_v1 = vpop.f32.mrb[3].mxu0 }
 0x3cd   : > { %v695_v2 = vmax.f32 %v692_v63, 0.0 }
 0x3cf   : > { %1065 = vmatmul.mubr.f32.vlgmr.msra.gmra.mrb[2].mxu1 %v695_v2 }
 0x4a2   : > { %v784_v5 = vpop.f32.mrb[2].mxu1 }
 0x4a3   : > { %v785_v6 = vadd.f32 %v856_v3, %v784_v5  ;;  %v1066_v7 = vpop.f32.mrb[3].mxu1 }
 0x4a5   : > { %v788_v8 = vadd.f32 %v785_v6, %v598_v57 }
 0x4a7   : > { %v789_v9 = vadd.f32 %v788_v8, %v1263_v0 }
 0x4a9   : > { %790 = vst [vmem:[%s381_s21] sm:$0xff] %v789_v9 }
 0x4aa PF: > { %s21_s17 = sadd.s32 1, %s1182_s17  }
 0x4ab   : > { %p18_p4 = scmp.ge.s32.totalorder %s21_s17, 4  }
 0x4ad   :  { %20 = sbr.rel (!%p18_p4) target bundleno = 1 (0x1), region = 94 }

// kernel: positionwise_adapted_ffn.1
= control target key start
LH: loop header
LB: loop body
LE: loop exit
PB: predicated region body
PF: predicated region fallthrough
CT: control target
= control target key end

     0   :  { %s1247_s17 = smov 0   ;;  %s1531_s0 = inlined_call_operand.vmem [shape: f32[16,128], index: 0, kind: input, shape index: {}]   ;;  %s1532_s1 = inlined_call_operand.vmem [shape: f32[1,128], index: 1, kind: input, shape index: {}]   ;;  %s1533_s2 = inlined_call_operand.vmem [shape: f32[1,128], index: 2, kind: input, shape index: {}]   ;;  %s1534_s3 = inlined_call_operand.vmem [shape: f32[128,128], index: 3, kind: input, shape index: {}]   ;;  %s1535_s4 = inlined_call_operand.vmem [shape: f32[1,128], index: 4, kind: input, shape index: {}]   ;;  %s1536_s5 = inlined_call_operand.vmem [shape: f32[128,128], index: 5, kind: input, shape index: {}]   ;;  %s1537_s6 = inlined_call_operand.vmem [shape: f32[1,128], index: 6, kind: input, shape index: {}]   ;;  %s1538_s7 = inlined_call_operand.vmem [shape: f32[128,128], index: 7, kind: input, shape index: {}]   ;;  %s1539_s8 = inlined_call_operand.vmem [shape: f32[1,128], index: 8, kind: input, shape index: {}]   ;;  %s1540_s9 = inlined_call_operand.vmem [shape: f32[128,128], index: 9, kind: input, shape index: {}]   ;;  %s1541_s10 = inlined_call_operand.vmem [shape: f32[1,128], index: 10, kind: input, shape index: {}]   ;;  %s1542_s11 = inlined_call_operand.vmem [shape: f32[16,128], index: 11, kind: output, shape index: {}]  }
   0x1 LB: > { %s844_s18 = sadd.s32 4294967295, %s1182_s17   ;;  %p848_p0 = scmp.ge.s32.totalorder %s1182_s17, 1  ;;  %s1182_s17 = sphi %s1247_s17, %s21_s17  }
   0x2   : > { %p336_p1 = scmp.lt.s32.totalorder %s1182_s17, 3 }
   0x4   : > { %p337_p2 = pnand %p848_p0, %p336_p1 }
   0x5   : > { %p374_p3 = scmp.lt.s32.totalorder (!%p337_p2), %s844_s18, 1  ;;  %v416_v1 = vld [vmem:[%s1534_s3] sm:$0xff] (!%p337_p2)  ;;  %v417_v2 = vld [vmem:[%s1534_s3 + $0x8] sm:$0xff] (!%p337_p2)  ;;  %v418_v3 = vld [vmem:[%s1534_s3 + $0x10] sm:$0xff] (!%p337_p2)  ;;  %v1184_v4 = vmov (!%p337_p2), 0.0|0.0   ;;  %v386_v11 = vlaneseq (!%p337_p2)  ;;  %vm1185_vm1 = vmmov (!%p337_p2), 0  }
   0x6   : > { %340 = sbr.rel (%p337_p2) target bundleno = 1194 (0x4aa), region = 64  ;;  %1067 = vmatprep.subr.bf16.mxu0 (!%p337_p2), %v1184_v4  ;;  %v1068_v5 = vpack.c.bf16 (!%p337_p2), %v417_v2, %v416_v1  ;;  %v419_v6 = vld [vmem:[%s1534_s3 + $0x18] sm:$0xff] (!%p337_p2)  ;;  %1091 = vmatprep.subr.bf16.mxu1 (!%p337_p2), %v1184_v4  ;;  %v420_v8 = vld [vmem:[%s1534_s3 + $0x20] sm:$0xff] (!%p337_p2)  ;;  %v421_v9 = vld [vmem:[%s1534_s3 + $0x28] sm:$0xff] (!%p337_p2)  ;;  %v1186_v26 = vmov (!%p337_p2), 0.0  }
   0x7   : > { %v1071_v7 = vpack.c.bf16 (!%p337_p2), %v419_v6, %v418_v3  ;;  %v1074_v10 = vpack.c.bf16 (!%p337_p2), %v421_v9, %v420_v8  ;;  %v387_v12 = vand.u32 (!%p337_p2), 127, %v386_v11  ;;  %v422_v18 = vld [vmem:[%s1534_s3 + $0x30] sm:$0xff] (!%p337_p2)  ;;  %v423_v19 = vld [vmem:[%s1534_s3 + $0x38] sm:$0xff] (!%p337_p2)  ;;  %v424_v21 = vld [vmem:[%s1534_s3 + $0x40] sm:$0xff] (!%p337_p2)  ;;  %959 = vmatprep.mubr.msk.f32.mxu0 (!%p337_p2), %vm1185_vm1, %v1186_v26  ;;  %994 = vmatprep.mubr.msk.f32.mxu1 (!%p337_p2), %vm1185_vm1, %v1186_v26 }
   0x8   : > { %1069 = vmatpush3.bf16.msra.mxu0 (!%p337_p2), %v1068_v5  ;;  %v1077_v20 = vpack.c.bf16 (!%p337_p2), %v423_v19, %v422_v18  ;;  %v425_v22 = vld [vmem:[%s1534_s3 + $0x48] sm:$0xff] (!%p337_p2)  ;;  %v426_v24 = vld [vmem:[%s1534_s3 + $0x50] sm:$0xff] (!%p337_p2)  ;;  %v427_v25 = vld [vmem:[%s1534_s3 + $0x58] sm:$0xff] (!%p337_p2) }
   0x9   : > { %1070 = vmatprep.subr.bf16.mxu0 (!%p337_p2), %v1184_v4  ;;  %vm388_vm0 = vcmp.lt.s32.totalorder (!%p337_p2), %v387_v12, 32  ;;  %v1080_v23 = vpack.c.bf16 (!%p337_p2), %v425_v22, %v424_v21  ;;  %v1083_v27 = vpack.c.bf16 (!%p337_p2), %v427_v25, %v426_v24  ;;  %v428_v28 = vld [vmem:[%s1534_s3 + $0x60] sm:$0xff] (!%p337_p2)  ;;  %v429_v29 = vld [vmem:[%s1534_s3 + $0x68] sm:$0xff] (!%p337_p2)  ;;  %v430_v31 = vld [vmem:[%s1534_s3 + $0x70] sm:$0xff] (!%p337_p2) }
   0xa   : > { %v1086_v30 = vpack.c.bf16 (!%p337_p2), %v429_v29, %v428_v28  ;;  %v431_v32 = vld [vmem:[%s1534_s3 + $0x78] sm:$0xff] (!%p337_p2)  ;;  %v509_v34 = vld [vmem:[%s1536_s5] sm:$0xff] (!%p337_p2)  ;;  %v510_v35 = vld [vmem:[%s1536_s5 + $0x8] sm:$0xff] (!%p337_p2) }
   0xb   : > { %v1089_v33 = vpack.c.bf16 (!%p337_p2), %v431_v32, %v430_v31  ;;  %v511_v36 = vld [vmem:[%s1536_s5 + $0x10] sm:$0xff] (!%p337_p2)  ;;  %v1092_v37 = vpack.c.bf16 (!%p337_p2), %v510_v35, %v509_v34  ;;  %v512_v38 = vld [vmem:[%s1536_s5 + $0x18] sm:$0xff] (!%p337_p2)  ;;  %v513_v40 = vld [vmem:[%s1536_s5 + $0x20] sm:$0xff] (!%p337_p2) }
   0xc   : > { %1072 = vmatpush3.bf16.msra.mxu0 (!%p337_p2), %v1071_v7  ;;  %v1095_v39 = vpack.c.bf16 (!%p337_p2), %v512_v38, %v511_v36  ;;  %v514_v41 = vld [vmem:[%s1536_s5 + $0x28] sm:$0xff] (!%p337_p2)  ;;  %v515_v43 = vld [vmem:[%s1536_s5 + $0x30] sm:$0xff] (!%p337_p2)  ;;  %v516_v44 = vld [vmem:[%s1536_s5 + $0x38] sm:$0xff] (!%p337_p2) }
   0xd   : > { %s1544_s18 = smov (!%p374_p3, %s844_s18), 1  ;;  %1073 = vmatprep.subr.bf16.mxu0 %v1184_v4  ;;  %1093 = vmatpush3.bf16.msra.mxu1 %v1092_v37  ;;  %v1098_v42 = vpack.c.bf16 %v514_v41, %v513_v40  ;;  %v1101_v45 = vpack.c.bf16 %v516_v44, %v515_v43  ;;  %v517_v46 = vld [vmem:[%s1536_s5 + $0x40] sm:$0xff]  ;;  %v518_v47 = vld [vmem:[%s1536_s5 + $0x48] sm:$0xff]  ;;  %v519_v49 = vld [vmem:[%s1536_s5 + $0x50] sm:$0xff] }
   0xe   : > { %s849_s19 = sshll.u32 %s1544_s18, 3  ;;  %1094 = vmatprep.subr.bf16.mxu1 %v1184_v4  ;;  %v1104_v48 = vpack.c.bf16 %v518_v47, %v517_v46  ;;  %v520_v50 = vld [vmem:[%s1536_s5 + $0x58] sm:$0xff]  ;;  %v521_v52 = vld [vmem:[%s1536_s5 + $0x60] sm:$0xff]  ;;  %v522_v53 = vld [vmem:[%s1536_s5 + $0x68] sm:$0xff] }
   0xf   : > { %s377_s22 = scalar_lea.vmem %s1531_s0, %s849_s19  ;;  %v1107_v51 = vpack.c.bf16 %v520_v50, %v519_v49  ;;  %v1110_v54 = vpack.c.bf16 %v522_v53, %v521_v52  ;;  %v851_v59 = vld [vmem:[%s1532_s1] ss:$0 sm:$0xff]  ;;  %v523_v1 = vld [vmem:[%s1536_s5 + $0x70] sm:$0xff]  ;;  %v524_v2 = vld [vmem:[%s1536_s5 + $0x78] sm:$0xff]  ;;  %s381_s21 = scalar_lea.vmem %s1542_s11, %s849_s19 }
  0x10   : > { %v1263_v0 = vld [vmem:[%s377_s22] sm:$0xff]  ;;  %1075 = vmatpush3.bf16.msra.mxu0 %v1074_v10  ;;  %v1113_v3 = vpack.c.bf16 %v524_v2, %v523_v1  ;;  %v604_v6 = vld [vmem:[%s1538_s7 + $0x8] sm:$0xff]  ;;  %v605_v7 = vld [vmem:[%s1538_s7 + $0x10] sm:$0xff] }
  0x11   : > { %383 = vadd.xlane.f32.xlu0 %v1263_v0  ;;  %1076 = vmatprep.subr.bf16.mxu0 %v1184_v4  ;;  %v852_v61 = vld [vmem:[%s1533_s2] ss:$0 sm:$0xff]  ;;  %v606_v9 = vld [vmem:[%s1538_s7 + $0x18] sm:$0xff]  ;;  %v608_v12 = vld [vmem:[%s1538_s7 + $0x28] sm:$0xff] }
  0x12   : > { %1096 = vmatpush3.bf16.msra.mxu1 %v1095_v39  ;;  %v603_v5 = vld [vmem:[%s1538_s7] sm:$0xff]  ;;  %v1119_v10 = vpack.c.bf16 %v606_v9, %v605_v7  ;;  %v612_v18 = vld [vmem:[%s1538_s7 + $0x48] sm:$0xff]  ;;  %v614_v21 = vld [vmem:[%s1538_s7 + $0x58] sm:$0xff] }
  0x13   : > { %1097 = vmatprep.subr.bf16.mxu1 %v1184_v4  ;;  %v1116_v8 = vpack.c.bf16 %v604_v6, %v603_v5  ;;  %v607_v11 = vld [vmem:[%s1538_s7 + $0x20] sm:$0xff]  ;;  %v616_v24 = vld [vmem:[%s1538_s7 + $0x68] sm:$0xff]  ;;  %v617_v32 = vld [vmem:[%s1538_s7 + $0x70] sm:$0xff] }
  0x14   : > { %1078 = vmatpush3.bf16.msra.mxu0 %v1077_v20  ;;  %v613_v20 = vld [vmem:[%s1538_s7 + $0x50] sm:$0xff]  ;;  %v696_v35 = vld [vmem:[%s1540_s9] sm:$0xff]  ;;  %v697_v36 = vld [vmem:[%s1540_s9 + $0x8] sm:$0xff] }
  0x15   : > { %1079 = vmatprep.subr.bf16.mxu0 %v1184_v4  ;;  %v1131_v22 = vpack.c.bf16 %v614_v21, %v613_v20  ;;  %v1140_v37 = vpack.c.bf16 %v697_v36, %v696_v35  ;;  %v699_v38 = vld [vmem:[%s1540_s9 + $0x18] sm:$0xff]  ;;  %v700_v40 = vld [vmem:[%s1540_s9 + $0x20] sm:$0xff]  ;;  %v701_v41 = vld [vmem:[%s1540_s9 + $0x28] sm:$0xff] }
  0x16   : > { %1099 = vmatpush3.bf16.msra.mxu1 %v1098_v42  ;;  %v1146_v42 = vpack.c.bf16 %v701_v41, %v700_v40  ;;  %v702_v43 = vld [vmem:[%s1540_s9 + $0x30] sm:$0xff]  ;;  %v703_v44 = vld [vmem:[%s1540_s9 + $0x38] sm:$0xff]  ;;  %v704_v46 = vld [vmem:[%s1540_s9 + $0x40] sm:$0xff] }
  0x17   : > { %1100 = vmatprep.subr.bf16.mxu1 %v1184_v4  ;;  %v705_v47 = vld [vmem:[%s1540_s9 + $0x48] sm:$0xff]  ;;  %v706_v49 = vld [vmem:[%s1540_s9 + $0x50] sm:$0xff]  ;;  %v707_v50 = vld [vmem:[%s1540_s9 + $0x58] sm:$0xff] }
  0x18   : > { %1081 = vmatpush3.bf16.msra.mxu0 %v1080_v23  ;;  %v615_v23 = vld [vmem:[%s1538_s7 + $0x60] sm:$0xff]  ;;  %v709_v53 = vld [vmem:[%s1540_s9 + $0x68] sm:$0xff] }
  0x19   : > { %1082 = vmatprep.subr.bf16.mxu0 %v1184_v4  ;;  %v1134_v25 = vpack.c.bf16 %v616_v24, %v615_v23  ;;  %v708_v52 = vld [vmem:[%s1540_s9 + $0x60] sm:$0xff] }
  0x1a   : > { %1102 = vmatpush3.bf16.msra.mxu1 %v1101_v45  ;;  %v1149_v45 = vpack.c.bf16 %v703_v44, %v702_v43 }
  0x1b   : > { %1103 = vmatprep.subr.bf16.mxu1 %v1184_v4 }
  0x1c   : > { %1084 = vmatpush3.bf16.msra.mxu0 %v1083_v27  ;;  %v853_v27 = vld [vmem:[%s1535_s4] ss:$0 sm:$0xff] }
  0x1d   : > { %1085 = vmatprep.subr.bf16.mxu0 %v1184_v4 }
  0x1e   : > { %1105 = vmatpush3.bf16.msra.mxu1 %v1104_v48  ;;  %v1152_v48 = vpack.c.bf16 %v705_v47, %v704_v46 }
  0x1f   : > { %1106 = vmatprep.subr.bf16.mxu1 %v1184_v4 }
  0x20   : > { %1087 = vmatpush3.bf16.msra.mxu0 %v1086_v30 }
  0x21   : > { %1088 = vmatprep.subr.bf16.mxu0 %v1184_v4 }
  0x22   : > { %1108 = vmatpush3.bf16.msra.mxu1 %v1107_v51  ;;  %v1155_v51 = vpack.c.bf16 %v707_v50, %v706_v49 }
  0x23   : > { %1109 = vmatprep.subr.bf16.mxu1 %v1184_v4 }
  0x24   : > { %1090 = vmatpush3.bf16.msra.mxu0 %v1089_v33  ;;  %v618_v33 = vld [vmem:[%s1538_s7 + $0x78] sm:$0xff] }
  0x25   : > { %1115 = vmatprep.subr.bf16.mxu0 %v1184_v4  ;;  %v1137_v34 = vpack.c.bf16 %v618_v33, %v617_v32 }
  0x26   : > { %1111 = vmatpush3.bf16.msra.mxu1 %v1110_v54  ;;  %v1158_v54 = vpack.c.bf16 %v709_v53, %v708_v52 }
  0x27   : > { %1112 = vmatprep.subr.bf16.mxu1 %v1184_v4 }
  0x2a   : > { %1114 = vmatpush3.bf16.msra.mxu1 %v1113_v3  ;;  %v856_v3 = vld [vmem:[%s1541_s10] ss:$0 sm:$0xff] }
  0x2b   : > { %1139 = vmatprep.subr.bf16.mxu1 %v1184_v4 }
  0x9e   : > { %v384_v13 = vpop.xlane.xlu0 %383 }
  0x9f   : > { %v385_v14 = vmul.f32 0.03125, %v384_v13  ;;  %v1122_v13 = vpack.c.bf16 %v608_v12, %v607_v11 }
  0xa1   : > { %v389_v15 = vsub.f32 %v1263_v0, %v385_v14  ;;  %v609_v14 = vld [vmem:[%s1538_s7 + $0x30] sm:$0xff] }
  0xa3   : > { %v1290_v16 = vsel %vm388_vm0, %v389_v15, 0.0  ;;  %v610_v15 = vld [vmem:[%s1538_s7 + $0x38] sm:$0xff] }
  0xa4   : > { %v391_v17 = vmul.f32 %v1290_v16, %v1290_v16 }
  0xa6   : > { %392 = vadd.xlane.f32.xlu0 %v391_v17  ;;  %v611_v17 = vld [vmem:[%s1538_s7 + $0x40] sm:$0xff] }
  0xa7   : > { %v1128_v19 = vpack.c.bf16 %v612_v18, %v611_v17 }
 0x133   : > { %v393_v55 = vpop.xlane.xlu0 %392 }
 0x134   : > { %v394_v56 = vmul.f32 0.03125, %v393_v55  ;;  %v854_v55 = vld [vmem:[%s1537_s6] ss:$0 sm:$0xff] }
 0x136   : > { %v397_v57 = vadd.f32 1e-06, %v394_v56 }
 0x138   : > { %1174 = vrsqrt.f32 %v397_v57 }
 0x142   : > { %v1175_v58 = vpop.eup %1174 }
 0x143   : > { %v399_v60 = vmul.f32 %v1175_v58, %v1290_v16  ;;  %v1125_v16 = vpack.c.bf16 %v610_v15, %v609_v14 }
 0x145   : > { %v406_v62 = vmul.f32 %v851_v59, %v399_v60  ;;  %v710_v59 = vld [vmem:[%s1540_s9 + $0x70] sm:$0xff]  ;;  %v711_v60 = vld [vmem:[%s1540_s9 + $0x78] sm:$0xff] }
 0x147   : > { %v413_v63 = vadd.f32 %v852_v61, %v406_v62  ;;  %v1161_v61 = vpack.c.bf16 %v711_v60, %v710_v59 }
 0x149   : > { %960 = vmatmul.mubr.f32.vlgmr.msra.gmra.mrb[0].mxu0 %v413_v63 }
 0x14a   : > { %1029 = vmatprep.mubr.msk.f32.mxu0 %vm1185_vm1, %v1186_v26  ;;  %1117 = vmatpush3.bf16.msra.mxu0 %v1116_v8 }
 0x14b   : > { %1118 = vmatprep.subr.bf16.mxu0 %v1184_v4 }
 0x14e   : > { %1120 = vmatpush3.bf16.msra.mxu0 %v1119_v10 }
 0x14f   : > { %1121 = vmatprep.subr.bf16.mxu0 %v1184_v4 }
 0x152   : > { %1123 = vmatpush3.bf16.msra.mxu0 %v1122_v13 }
 0x153   : > { %1124 = vmatprep.subr.bf16.mxu0 %v1184_v4 }
 0x156   : > { %1126 = vmatpush3.bf16.msra.mxu0 %v1125_v16 }
 0x157   : > { %1127 = vmatprep.subr.bf16.mxu0 %v1184_v4 }
 0x15a   : > { %1129 = vmatpush3.bf16.msra.mxu0 %v1128_v19 }
 0x15b   : > { %1130 = vmatprep.subr.bf16.mxu0 %v1184_v4 }
 0x15e   : > { %1132 = vmatpush3.bf16.msra.mxu0 %v1131_v22 }
 0x15f   : > { %1133 = vmatprep.subr.bf16.mxu0 %v1184_v4 }
 0x162   : > { %1135 = vmatpush3.bf16.msra.mxu0 %v1134_v25 }
 0x163   : > { %1136 = vmatprep.subr.bf16.mxu0 %v1184_v4 }
 0x166   : > { %1138 = vmatpush3.bf16.msra.mxu0 %v1137_v34 }
 0x21c   : > { %v504_v28 = vpop.f32.mrb[0].mxu0 }
 0x21d   : > { %v505_v29 = vadd.f32 %v853_v27, %v504_v28  ;;  %v961_v30 = vpop.f32.mrb[1].mxu0 }
 0x21f   : > { %v508_v31 = vmax.f32 %v505_v29, 0.0 }
 0x221   : > { %995 = vmatmul.mubr.f32.vlgmr.msra.gmra.mrb[0].mxu1 %v508_v31 }
 0x222   : > { %1064 = vmatprep.mubr.msk.f32.mxu1 %vm1185_vm1, %v1186_v26  ;;  %v698_v26 = vld [vmem:[%s1540_s9 + $0x10] sm:$0xff]  ;;  %1141 = vmatpush3.bf16.msra.mxu1 %v1140_v37 }
 0x223   : > { %v1143_v39 = vpack.c.bf16 %v699_v38, %v698_v26  ;;  %1142 = vmatprep.subr.bf16.mxu1 %v1184_v4 }
 0x226   : > { %1144 = vmatpush3.bf16.msra.mxu1 %v1143_v39 }
 0x227   : > { %1145 = vmatprep.subr.bf16.mxu1 %v1184_v4 }
 0x22a   : > { %1147 = vmatpush3.bf16.msra.mxu1 %v1146_v42 }
 0x22b   : > { %1148 = vmatprep.subr.bf16.mxu1 %v1184_v4 }
 0x22e   : > { %1150 = vmatpush3.bf16.msra.mxu1 %v1149_v45 }
 0x22f   : > { %1151 = vmatprep.subr.bf16.mxu1 %v1184_v4 }
 0x232   : > { %1153 = vmatpush3.bf16.msra.mxu1 %v1152_v48 }
 0x233   : > { %1154 = vmatprep.subr.bf16.mxu1 %v1184_v4 }
 0x236   : > { %1156 = vmatpush3.bf16.msra.mxu1 %v1155_v51 }
 0x237   : > { %1157 = vmatprep.subr.bf16.mxu1 %v1184_v4 }
 0x23a   : > { %1159 = vmatpush3.bf16.msra.mxu1 %v1158_v54 }
 0x23b   : > { %1160 = vmatprep.subr.bf16.mxu1 %v1184_v4  ;;  %v855_v4 = vld [vmem:[%s1539_s8] ss:$0 sm:$0xff] }
 0x23e   : > { %1162 = vmatpush3.bf16.msra.mxu1 %v1161_v61 }
 0x2f4   : > { %v597_v56 = vpop.f32.mrb[0].mxu1 }
 0x2f5   : > { %v598_v57 = vadd.f32 %v854_v55, %v597_v56  ;;  %v996_v58 = vpop.f32.mrb[1].mxu1 }
 0x2f7   : > { %1030 = vmatmul.mubr.f32.vlgmr.msra.gmra.mrb[2].mxu0 %v598_v57 }
 0x3ca   : > { %v691_v62 = vpop.f32.mrb[2].mxu0 }
 0x3cb   : > { %v692_v63 = vadd.f32 %v855_v4, %v691_v62  ;;  %v1031_v1 = vpop.f32.mrb[3].mxu0 }
 0x3cd   : > { %v695_v2 = vmax.f32 %v692_v63, 0.0 }
 0x3cf   : > { %1065 = vmatmul.mubr.f32.vlgmr.msra.gmra.mrb[2].mxu1 %v695_v2 }
 0x4a2   : > { %v784_v5 = vpop.f32.mrb[2].mxu1 }
 0x4a3   : > { %v785_v6 = vadd.f32 %v856_v3, %v784_v5  ;;  %v1066_v7 = vpop.f32.mrb[3].mxu1 }
 0x4a5   : > { %v788_v8 = vadd.f32 %v785_v6, %v598_v57 }
 0x4a7   : > { %v789_v9 = vadd.f32 %v788_v8, %v1263_v0 }
 0x4a9   : > { %790 = vst [vmem:[%s381_s21] sm:$0xff] %v789_v9 }
 0x4aa PF: > { %s21_s17 = sadd.s32 1, %s1182_s17  }
 0x4ab   : > { %p18_p4 = scmp.ge.s32.totalorder %s21_s17, 4  }
 0x4ad   :  { %20 = sbr.rel (!%p18_p4) target bundleno = 1 (0x1), region = 94 }

</bundles_post_ra>
